<compile_context>
chip_gen: v5e
topology: v5e:2x2
jax: 0.10.0
libtpu: 0.0.40
codegen_flags: <defaults>
</compile_context>

<pallas_src>
import jax
import jax.numpy as jnp
from jax.experimental import pallas as pl
from jax.experimental.pallas import tpu as pltpu

N_states = 7
N_actions = 101          # len(np.linspace(-5, 5, 101))
H1 = 256
H2 = 128

K_PAD = 8                # fc1 contraction dim padded to the f32 sublane tile
OUT_PAD = 128            # lane-dense output width (>= N_actions)


def _round_up(n, m):
    return ((n + m - 1) // m) * m


def mlp_kernel(x_ref, w1_ref, b1_ref, w2_ref, b2_ref, w3_ref, b3_ref, o_ref):
    # fc1 + relu
    h1 = jnp.dot(x_ref[...], w1_ref[...], preferred_element_type=jnp.float32) + b1_ref[...]
    h1 = jnp.maximum(h1, 0.0)
    # fc2 + relu
    h2 = jnp.dot(h1, w2_ref[...], preferred_element_type=jnp.float32) + b2_ref[...]
    h2 = jnp.maximum(h2, 0.0)
    # out (no activation); lane-dense (TB, 128) store
    o_ref[...] = jnp.dot(h2, w3_ref[...], preferred_element_type=jnp.float32) + b3_ref[...]


def init_params(key):
    """Deterministic init matching Net.__init__: weights ~ N(0, 0.1),
    biases use PyTorch nn.Linear default U(-1/sqrt(fan_in), 1/sqrt(fan_in)).
    Weights are stored (in_features, out_features)."""
    ks = jax.random.split(key, 6)

    def linear(kw, kb, fan_in, fan_out):
        w = 0.1 * jax.random.normal(kw, (fan_in, fan_out), dtype=jnp.float32)
        bound = 1.0 / jnp.sqrt(jnp.float32(fan_in))
        b = jax.random.uniform(kb, (1, fan_out), dtype=jnp.float32,
                               minval=-bound, maxval=bound)
        return w, b

    w1, b1 = linear(ks[0], ks[1], N_states, H1)
    w2, b2 = linear(ks[2], ks[3], H1, H2)
    w3, b3 = linear(ks[4], ks[5], H2, N_actions)
    return (w1, b1, w2, b2, w3, b3)


def pad_params(params):
    """Zero-pad fc1's input dim 7 -> 8 and the output layer 101 -> 128 lanes.
    Padded rows/columns are zero so the math is unchanged; do this once."""
    w1, b1, w2, b2, w3, b3 = params
    w1p = jnp.pad(w1, ((0, K_PAD - N_states), (0, 0)))
    w3p = jnp.pad(w3, ((0, 0), (0, OUT_PAD - N_actions)))
    b3p = jnp.pad(b3, ((0, 0), (0, OUT_PAD - N_actions)))
    return (w1p, b1, w2, b2, w3p, b3p)
    # TODO(synk): optional bf16 weight cast (largest MXU win on v5e/v6e); kept f32
    # here to preserve the 1e-5 parity check with the PyTorch-style reference.


def net_forward(x, padded_params, *, tile_b=512):
    """x: (B, N_states) f32. Returns (B, N_actions) f32."""
    w1p, b1, w2, b2, w3p, b3p = padded_params
    B = x.shape[0]

    # Batch tile: multiple of 8 (f32 sublane), shrunk for tiny batches, capped at
    # tile_b so double-buffered x/out tiles + resident weights stay far below the
    # VMEM limit while amortizing per-grid-step overhead.
    TB = min(tile_b, _round_up(max(B, 1), 8))
    n_tiles = pl.cdiv(B, TB)
    B_pad = n_tiles * TB

    # Pad batch and feature dim (zero rows/cols are harmless through the MLP).
    x_p = jnp.pad(x, ((0, B_pad - B), (0, K_PAD - N_states)))

    def resident(shape):
        # Same block for every grid step -> weights/biases stay in VMEM.
        return pl.BlockSpec(shape, lambda i: (0, 0))

    out = pl.pallas_call(
        mlp_kernel,
        out_shape=jax.ShapeDtypeStruct((B_pad, OUT_PAD), jnp.float32),
        grid_spec=pltpu.PrefetchScalarGridSpec(
            num_scalar_prefetch=0,
            grid=(n_tiles,),
            in_specs=[
                pl.BlockSpec((TB, K_PAD), lambda i: (i, 0)),   # x tile (pipelined)
                resident((K_PAD, H1)),                          # w1
                resident((1, H1)),                              # b1
                resident((H1, H2)),                             # w2
                resident((1, H2)),                              # b2
                resident((H2, OUT_PAD)),                        # w3 (lane-padded)
                resident((1, OUT_PAD)),                         # b3 (lane-padded)
            ],
            out_specs=pl.BlockSpec((TB, OUT_PAD), lambda i: (i, 0)),
        ),
        compiler_params=pltpu.CompilerParams(
            dimension_semantics=("parallel",),   # shard batch tiles across TCs (v7x)
        ),
    )(x_p, w1p, b1, w2, b2, w3p, b3p)

    return out[:B, :N_actions]


def _reference(x, params):
    w1, b1, w2, b2, w3, b3 = params
    h = jnp.maximum(x @ w1 + b1, 0.0)
    h = jnp.maximum(h @ w2 + b2, 0.0)
    return h @ w3 + b3


if __name__ == "__main__":
    key = jax.random.PRNGKey(0)
    kparams, kx1, kx2, kx3 = jax.random.split(key, 4)
    params = init_params(kparams)
    padded = pad_params(params)

    fwd = jax.jit(net_forward)

    # Small case consistent with the module (B=2 states of dim 7).
    B = 2
    x = jax.random.normal(kx1, (B, N_states), dtype=jnp.float32)
    out = jax.block_until_ready(fwd(x, padded))
    ref = _reference(x, params)
    assert out.shape == (B, N_actions)
    assert jnp.allclose(out, ref, atol=1e-5, rtol=1e-5)

    # Non-aligned batch (single adaptive tile, 260 -> 264 rows).
    B2 = 260
    x2 = jax.random.normal(kx2, (B2, N_states), dtype=jnp.float32)
    out2 = jax.block_until_ready(net_forward(x2, padded))
    ref2 = _reference(x2, params)
    assert out2.shape == (B2, N_actions)
    assert jnp.allclose(out2, ref2, atol=1e-5, rtol=1e-5)

    # Larger non-aligned batch to exercise the multi-tile pipelined grid.
    B3 = 1030
    x3 = jax.random.normal(kx3, (B3, N_states), dtype=jnp.float32)
    out3 = jax.block_until_ready(net_forward(x3, padded))
    ref3 = _reference(x3, params)
    assert out3.shape == (B3, N_actions)
    assert jnp.allclose(out3, ref3, atol=1e-5, rtol=1e-5)

    print("KERNEL_OK")
</pallas_src>

<mosaic_0001>
module attributes {stable_mosaic.version = 11 : i64} {
  func.func @mlp_kernel(%arg0: i32, %arg1: memref<8x8xf32, #tpu.memory_space<vmem>>, %arg2: memref<8x256xf32, #tpu.memory_space<vmem>>, %arg3: memref<1x256xf32, #tpu.memory_space<vmem>>, %arg4: memref<256x128xf32, #tpu.memory_space<vmem>>, %arg5: memref<1x128xf32, #tpu.memory_space<vmem>>, %arg6: memref<128x128xf32, #tpu.memory_space<vmem>>, %arg7: memref<1x128xf32, #tpu.memory_space<vmem>>, %arg8: memref<8x128xf32, #tpu.memory_space<vmem>>) attributes {dimension_semantics = [#tpu.dimension_semantics<parallel>], iteration_bounds = array<i64: 1>, scalar_prefetch = 0 : i64, scratch_operands = 0 : i64, tpu.core_type = #tpu.core_type<tc>, window_params = [{transform_indices = @transform_0, window_bounds = array<i64: 8, 8>}, {pipeline_mode = #tpu.pipeline_mode<synchronous>, transform_indices = @transform_1, window_bounds = array<i64: 8, 256>}, {pipeline_mode = #tpu.pipeline_mode<synchronous>, transform_indices = @transform_2, window_bounds = array<i64: 1, 256>}, {pipeline_mode = #tpu.pipeline_mode<synchronous>, transform_indices = @transform_3, window_bounds = array<i64: 256, 128>}, {pipeline_mode = #tpu.pipeline_mode<synchronous>, transform_indices = @transform_4, window_bounds = array<i64: 1, 128>}, {pipeline_mode = #tpu.pipeline_mode<synchronous>, transform_indices = @transform_5, window_bounds = array<i64: 128, 128>}, {pipeline_mode = #tpu.pipeline_mode<synchronous>, transform_indices = @transform_6, window_bounds = array<i64: 1, 128>}, {transform_indices = @transform_7, window_bounds = array<i64: 8, 128>}]} {
    %c0 = arith.constant 0 : index
    %c0_0 = arith.constant 0 : index
    %0 = vector.load %arg1[%c0, %c0_0] : memref<8x8xf32, #tpu.memory_space<vmem>>, vector<8x8xf32>
    %c0_1 = arith.constant 0 : index
    %c0_2 = arith.constant 0 : index
    %1 = vector.load %arg2[%c0_1, %c0_2] : memref<8x256xf32, #tpu.memory_space<vmem>>, vector<8x256xf32>
    %cst = arith.constant dense<0.000000e+00> : vector<8x256xf32>
    %2 = tpu.matmul %0, %1, %cst {dimension_numbers = #tpu.dot_dimension_numbers<[1], [0], [0], [1], [0, 0, 1, 1], [], []>} : vector<8x8xf32>, vector<8x256xf32>, vector<8x256xf32> -> vector<8x256xf32>
    %c0_3 = arith.constant 0 : index
    %c0_4 = arith.constant 0 : index
    %3 = vector.load %arg3[%c0_3, %c0_4] : memref<1x256xf32, #tpu.memory_space<vmem>>, vector<1x256xf32>
    %4 = vector.broadcast %3 : vector<1x256xf32> to vector<8x256xf32>
    %5 = arith.addf %2, %4 : vector<8x256xf32>
    %cst_5 = arith.constant 0.000000e+00 : f32
    %6 = vector.broadcast %cst_5 : f32 to vector<8x256xf32>
    %7 = arith.maximumf %5, %6 : vector<8x256xf32>
    %c0_6 = arith.constant 0 : index
    %c0_7 = arith.constant 0 : index
    %8 = vector.load %arg4[%c0_6, %c0_7] : memref<256x128xf32, #tpu.memory_space<vmem>>, vector<256x128xf32>
    %cst_8 = arith.constant dense<0.000000e+00> : vector<8x128xf32>
    %9 = tpu.matmul %7, %8, %cst_8 {dimension_numbers = #tpu.dot_dimension_numbers<[1], [0], [0], [1], [0, 0, 1, 1], [], []>} : vector<8x256xf32>, vector<256x128xf32>, vector<8x128xf32> -> vector<8x128xf32>
    %c0_9 = arith.constant 0 : index
    %c0_10 = arith.constant 0 : index
    %10 = vector.load %arg5[%c0_9, %c0_10] : memref<1x128xf32, #tpu.memory_space<vmem>>, vector<1x128xf32>
    %11 = vector.broadcast %10 : vector<1x128xf32> to vector<8x128xf32>
    %12 = arith.addf %9, %11 : vector<8x128xf32>
    %cst_11 = arith.constant 0.000000e+00 : f32
    %13 = vector.broadcast %cst_11 : f32 to vector<8x128xf32>
    %14 = arith.maximumf %12, %13 : vector<8x128xf32>
    %c0_12 = arith.constant 0 : index
    %c0_13 = arith.constant 0 : index
    %15 = vector.load %arg6[%c0_12, %c0_13] : memref<128x128xf32, #tpu.memory_space<vmem>>, vector<128x128xf32>
    %cst_14 = arith.constant dense<0.000000e+00> : vector<8x128xf32>
    %16 = tpu.matmul %14, %15, %cst_14 {dimension_numbers = #tpu.dot_dimension_numbers<[1], [0], [0], [1], [0, 0, 1, 1], [], []>} : vector<8x128xf32>, vector<128x128xf32>, vector<8x128xf32> -> vector<8x128xf32>
    %c0_15 = arith.constant 0 : index
    %c0_16 = arith.constant 0 : index
    %17 = vector.load %arg7[%c0_15, %c0_16] : memref<1x128xf32, #tpu.memory_space<vmem>>, vector<1x128xf32>
    %18 = vector.broadcast %17 : vector<1x128xf32> to vector<8x128xf32>
    %19 = arith.addf %16, %18 : vector<8x128xf32>
    %c0_17 = arith.constant 0 : index
    %c0_18 = arith.constant 0 : index
    %20 = vector.load %arg8[%c0_17, %c0_18] : memref<8x128xf32, #tpu.memory_space<vmem>>, vector<8x128xf32>
    tpu.vector_store %arg8[%c0_17, %c0_18], %19 {strides = array<i32>} : memref<8x128xf32, #tpu.memory_space<vmem>>, vector<8x128xf32>,
    return
  }
  func.func @transform_0(%arg0: i32) -> (i32, i32) {
    %c0_i32 = arith.constant 0 : i32
    %c0_i32_0 = arith.constant 0 : i32
    return %arg0, %c0_i32 : i32, i32
  }
  func.func @transform_1(%arg0: i32) -> (i32, i32) {
    %c0_i32 = arith.constant 0 : i32
    %c0_i32_0 = arith.constant 0 : i32
    %c0_i32_1 = arith.constant 0 : i32
    return %c0_i32, %c0_i32_0 : i32, i32
  }
  func.func @transform_2(%arg0: i32) -> (i32, i32) {
    %c0_i32 = arith.constant 0 : i32
    %c0_i32_0 = arith.constant 0 : i32
    %c0_i32_1 = arith.constant 0 : i32
    return %c0_i32, %c0_i32_0 : i32, i32
  }
  func.func @transform_3(%arg0: i32) -> (i32, i32) {
    %c0_i32 = arith.constant 0 : i32
    %c0_i32_0 = arith.constant 0 : i32
    %c0_i32_1 = arith.constant 0 : i32
    return %c0_i32, %c0_i32_0 : i32, i32
  }
  func.func @transform_4(%arg0: i32) -> (i32, i32) {
    %c0_i32 = arith.constant 0 : i32
    %c0_i32_0 = arith.constant 0 : i32
    %c0_i32_1 = arith.constant 0 : i32
    return %c0_i32, %c0_i32_0 : i32, i32
  }
  func.func @transform_5(%arg0: i32) -> (i32, i32) {
    %c0_i32 = arith.constant 0 : i32
    %c0_i32_0 = arith.constant 0 : i32
    %c0_i32_1 = arith.constant 0 : i32
    return %c0_i32, %c0_i32_0 : i32, i32
  }
  func.func @transform_6(%arg0: i32) -> (i32, i32) {
    %c0_i32 = arith.constant 0 : i32
    %c0_i32_0 = arith.constant 0 : i32
    %c0_i32_1 = arith.constant 0 : i32
    return %c0_i32, %c0_i32_0 : i32, i32
  }
  func.func @transform_7(%arg0: i32) -> (i32, i32) {
    %c0_i32 = arith.constant 0 : i32
    %c0_i32_0 = arith.constant 0 : i32
    return %arg0, %c0_i32 : i32, i32
  }
}

</mosaic_0001>

<bundles_post_ra>
// kernel: net_forward.1
= control target key start
LH: loop header
LB: loop body
LE: loop exit
PB: predicated region body
PF: predicated region fallthrough
CT: control target
= control target key end

     0   :  { %12 = vsyncpa [#allocation3], 0  ;;  %s406_s0 = inlined_call_operand.vmem [shape: f32[8,8], index: 0, kind: input, shape index: {}]   ;;  %s407_s1 = inlined_call_operand.hbm [shape: f32[8,256], index: 1, kind: input, shape index: {}]   ;;  %s408_s2 = inlined_call_operand.vmem [shape: f32[1,256], index: 2, kind: input, shape index: {}]   ;;  %s409_s3 = inlined_call_operand.hbm [shape: f32[256,128], index: 3, kind: input, shape index: {}]   ;;  %s410_s4 = inlined_call_operand.vmem [shape: f32[1,128], index: 4, kind: input, shape index: {}]   ;;  %s411_s5 = inlined_call_operand.hbm [shape: f32[128,128], index: 5, kind: input, shape index: {}]   ;;  %s412_s6 = inlined_call_operand.vmem [shape: f32[1,128], index: 6, kind: input, shape index: {}]   ;;  %s413_s7 = inlined_call_operand.vmem [shape: f32[8,128], index: 7, kind: output, shape index: {}]  }
   0x1   :  { %13 = vsyncpa [#allocation5], 0  ;;  %s33_s26 = sshll.u32 %s409_s3, 4  ;;  %s335_s27 = smov [#allocation4]   ;;  %s34_s26 = int_to_ptr.hbm [resolvable:$true] %s33_s26 }
   0x2   :  { %s35_s28 = sshll.u32 %s335_s27, 4  ;;  %s21_s8 = sshll.u32 %s407_s1, 4  ;;  %s36_s28 = int_to_ptr.vmem [resolvable:$true] %s35_s28  ;;  %s22_s8 = int_to_ptr.hbm [resolvable:$true] %s21_s8 }
   0x3   :  { %s336_s9 = smov 128   ;;  %s337_s10 = smov 8  }
   0x4   :  { %41 = dma.hbm_to_vmem [thread:$0]  %s34_s26, 4096, %s36_s28, [#allocation5], %s336_s9, %s336_s9, %s337_s10  }
   0x5   :  { %s338_s11 = smov [#allocation2]   ;;  %s48_s15 = sshll.u32 %s411_s5, 4  ;;  %s49_s15 = int_to_ptr.hbm [resolvable:$true] %s48_s15 }
   0x6   :  { %s23_s12 = sshll.u32 %s338_s11, 4  ;;  %s339_s3 = smov [#allocation6]   ;;  %s24_s12 = int_to_ptr.vmem [resolvable:$true] %s23_s12 }
   0x7   :  { %26 = dma.hbm_to_vmem [thread:$0]  %s22_s8, 256, %s24_s12, [#allocation3]  }
   0x8   :  { %s50_s16 = sshll.u32 %s339_s3, 4  ;;  %s51_s16 = int_to_ptr.vmem [resolvable:$true] %s50_s16 }
   0x9   :  { %56 = dma.hbm_to_vmem [thread:$0]  %s49_s15, 2048, %s51_s16, [#allocation5], %s336_s9, %s336_s9, %s337_s10  }
   0xa   :  { %331 = dma.done.wait [#allocation3], 256  }
   0xb   :  { %332 = vsyncadd [#allocation3], 4294967040 }
   0xc   :  { %333 = dma.done.wait [#allocation5], 6144  }
   0xd   :  { %334 = vsyncadd [#allocation5], 4294961152  ;;  %vm80_vm0 = vcmask 64512   ;;  %v72_v0 = vld [vmem:[#allocation2] sm:$0xff]  ;;  %v73_v2 = vld [vmem:[#allocation2 + $0x8] sm:$0xff] }
   0xe   :  { %v71_v1 = vld [vmem:[%s406_s0] sm:$0xff]  ;;  %99 = vmatpush.msra.mxu1 %v72_v0  ;;  %v141_v3 = vld [vmem:[#allocation4 + $0x78] sm:$0xff]  ;;  %v139_v6 = vld [vmem:[#allocation4 + $0x68] sm:$0xff] }
   0xf   :  { %v140_v4 = vld [vmem:[#allocation4 + $0x70] sm:$0xff]  ;;  %250 = vmatmul.msk.f32.vlgmr.msra.gmra.mxu1 %vm80_vm0, %v71_v1  ;;  %162 = vmatpush.msra.mxu2 %v141_v3  ;;  %v157_v5 = vld [vmem:[#allocation4 + $0xf8] sm:$0xff]  ;;  %v155_v8 = vld [vmem:[#allocation4 + $0xe8] sm:$0xff] }
  0x10   :  { %119 = vmatpush.msrb.mxu1 %v73_v2  ;;  %182 = vmatpush.msra.mxu3 %v157_v5  ;;  %v156_v7 = vld [vmem:[#allocation4 + $0xf0] sm:$0xff]  ;;  %v138_v9 = vld [vmem:[#allocation4 + $0x60] sm:$0xff]  ;;  %v137_v11 = vld [vmem:[#allocation4 + $0x58] sm:$0xff] }
  0x11   :  { %163 = vmatpush.msra.mxu2 %v140_v4  ;;  %v154_v10 = vld [vmem:[#allocation4 + $0xe0] sm:$0xff]  ;;  %v153_v12 = vld [vmem:[#allocation4 + $0xd8] sm:$0xff]  ;;  %v136_v13 = vld [vmem:[#allocation4 + $0x50] sm:$0xff] }
  0x12   :  { %183 = vmatpush.msra.mxu3 %v156_v7  ;;  %v152_v14 = vld [vmem:[#allocation4 + $0xd0] sm:$0xff]  ;;  %v135_v15 = vld [vmem:[#allocation4 + $0x48] sm:$0xff]  ;;  %v134_v17 = vld [vmem:[#allocation4 + $0x40] sm:$0xff] }
  0x13   :  { %164 = vmatpush.msra.mxu2 %v139_v6  ;;  %v151_v16 = vld [vmem:[#allocation4 + $0xc8] sm:$0xff]  ;;  %v150_v18 = vld [vmem:[#allocation4 + $0xc0] sm:$0xff]  ;;  %v133_v19 = vld [vmem:[#allocation4 + $0x38] sm:$0xff] }
  0x14   :  { %184 = vmatpush.msra.mxu3 %v155_v8  ;;  %v149_v20 = vld [vmem:[#allocation4 + $0xb8] sm:$0xff]  ;;  %v132_v21 = vld [vmem:[#allocation4 + $0x30] sm:$0xff]  ;;  %v131_v22 = vld [vmem:[#allocation4 + $0x28] sm:$0xff] }
  0x15   :  { %165 = vmatpush.msra.mxu2 %v138_v9  ;;  %v130_v23 = vld [vmem:[#allocation4 + $0x20] sm:$0xff]  ;;  %v129_v24 = vld [vmem:[#allocation4 + $0x18] sm:$0xff]  ;;  %v128_v25 = vld [vmem:[#allocation4 + $0x10] sm:$0xff] }
  0x16   :  { %185 = vmatpush.msra.mxu3 %v154_v10  ;;  %v148_v26 = vld [vmem:[#allocation4 + $0xb0] sm:$0xff]  ;;  %v127_v27 = vld [vmem:[#allocation4 + $0x8] sm:$0xff]  ;;  %v126_v29 = vld [vmem:[#allocation4] sm:$0xff] }
  0x17   :  { %251 = vmatmul.msk.f32.vlgmr.msrb.gmra.mxu1 %vm80_vm0, %v71_v1  ;;  %166 = vmatpush.msra.mxu2 %v137_v11  ;;  %v147_v28 = vld [vmem:[#allocation4 + $0xa8] sm:$0xff]  ;;  %v146_v30 = vld [vmem:[#allocation4 + $0xa0] sm:$0xff]  ;;  %v145_v31 = vld [vmem:[#allocation4 + $0x98] sm:$0xff] }
  0x18   :  { %186 = vmatpush.msra.mxu3 %v153_v12  ;;  %v144_v32 = vld [vmem:[#allocation4 + $0x90] sm:$0xff]  ;;  %v143_v33 = vld [vmem:[#allocation4 + $0x88] sm:$0xff]  ;;  %v142_v34 = vld [vmem:[#allocation4 + $0x80] sm:$0xff] }
  0x19   :  { %167 = vmatpush.msra.mxu2 %v136_v13  ;;  %v218_v35 = vld [vmem:[#allocation6 + $0x78] sm:$0xff]  ;;  %v217_v36 = vld [vmem:[#allocation6 + $0x70] sm:$0xff]  ;;  %v216_v37 = vld [vmem:[#allocation6 + $0x68] sm:$0xff] }
  0x1a   :  { %187 = vmatpush.msra.mxu3 %v152_v14  ;;  %223 = vmatpush.msra.mxu0 %v218_v35  ;;  %v215_v38 = vld [vmem:[#allocation6 + $0x60] sm:$0xff]  ;;  %v214_v39 = vld [vmem:[#allocation6 + $0x58] sm:$0xff]  ;;  %v213_v40 = vld [vmem:[#allocation6 + $0x50] sm:$0xff] }
  0x1b   :  { %168 = vmatpush.msra.mxu2 %v135_v15  ;;  %v212_v41 = vld [vmem:[#allocation6 + $0x48] sm:$0xff]  ;;  %v211_v42 = vld [vmem:[#allocation6 + $0x40] sm:$0xff]  ;;  %v74_v43 = vld [vmem:[%s408_s2] sm:$0x3] }
  0x1c   :  { %188 = vmatpush.msra.mxu3 %v151_v16  ;;  %224 = vmatpush.msra.mxu0 %v217_v36  ;;  %v210_v44 = vld [vmem:[#allocation6 + $0x38] sm:$0xff]  ;;  %v76_v45 = vperm.slane %v74_v43, 0  ;;  %v77_v49 = vperm.slane %v74_v43, 1  ;;  %v209_v53 = vld [vmem:[#allocation6 + $0x30] sm:$0xff]  ;;  %v208_v54 = vld [vmem:[#allocation6 + $0x28] sm:$0xff] }
  0x1d   :  { %169 = vmatpush.msra.mxu2 %v134_v17  ;;  %v207_v55 = vld [vmem:[#allocation6 + $0x20] sm:$0xff]  ;;  %v206_v56 = vld [vmem:[#allocation6 + $0x18] sm:$0xff]  ;;  %v205_v57 = vld [vmem:[#allocation6 + $0x10] sm:$0xff] }
  0x1e   :  { %189 = vmatpush.msra.mxu3 %v150_v18  ;;  %225 = vmatpush.msra.mxu0 %v216_v37  ;;  %v204_v58 = vld [vmem:[#allocation6 + $0x8] sm:$0xff]  ;;  %v203_v59 = vld [vmem:[#allocation6] sm:$0xff]  ;;  %v257_v60 = vld [vmem:[%s410_s4] ss:$0 sm:$0xff] }
  0x1f   :  { %170 = vmatpush.msra.mxu2 %v133_v19  ;;  %v258_v2 = vld [vmem:[%s412_s6] ss:$0 sm:$0xff] }
  0x20   :  { %190 = vmatpush.msra.mxu3 %v149_v20  ;;  %226 = vmatpush.msra.mxu0 %v215_v38 }
  0x21   :  { %171 = vmatpush.msra.mxu2 %v132_v21 }
  0x22   :  { %191 = vmatpush.msra.mxu3 %v148_v26  ;;  %227 = vmatpush.msra.mxu0 %v214_v39 }
  0x23   :  { %172 = vmatpush.msra.mxu2 %v131_v22 }
  0x24   :  { %192 = vmatpush.msra.mxu3 %v147_v28  ;;  %228 = vmatpush.msra.mxu0 %v213_v40 }
  0x25   :  { %173 = vmatpush.msra.mxu2 %v130_v23 }
  0x26   :  { %193 = vmatpush.msra.mxu3 %v146_v30  ;;  %229 = vmatpush.msra.mxu0 %v212_v41 }
  0x27   :  { %174 = vmatpush.msra.mxu2 %v129_v24 }
  0x28   :  { %194 = vmatpush.msra.mxu3 %v145_v31  ;;  %230 = vmatpush.msra.mxu0 %v211_v42 }
  0x29   :  { %175 = vmatpush.msra.mxu2 %v128_v25 }
  0x2a   :  { %195 = vmatpush.msra.mxu3 %v144_v32  ;;  %231 = vmatpush.msra.mxu0 %v210_v44 }
  0x2b   :  { %176 = vmatpush.msra.mxu2 %v127_v27 }
  0x2c   :  { %196 = vmatpush.msra.mxu3 %v143_v33  ;;  %232 = vmatpush.msra.mxu0 %v209_v53 }
  0x2d   :  { %177 = vmatpush.msra.mxu2 %v126_v29 }
  0x2e   :  { %197 = vmatpush.msra.mxu3 %v142_v34  ;;  %233 = vmatpush.msra.mxu0 %v208_v54 }
  0x30   :  { %234 = vmatpush.msra.mxu0 %v207_v55 }
  0x32   :  { %235 = vmatpush.msra.mxu0 %v206_v56 }
  0x34   :  { %236 = vmatpush.msra.mxu0 %v205_v57 }
  0x36   :  { %237 = vmatpush.msra.mxu0 %v204_v58 }
  0x38   :  { %238 = vmatpush.msra.mxu0 %v203_v59 }
  0x8c   :  { %v101_v46 = vpop.f32.mrf.mxu1 }
  0x8d   :  { %v102_v47 = vadd.f32 %v101_v46, %v76_v45 }
  0x8f   :  { %v124_v48 = vmax.f32 %v102_v47, 0.0 }
  0x91   :  { %178 = vmatmul.f32.vlgmr.msra.gmra.mxu2 %v124_v48 }
  0x94   :  { %v121_v50 = vpop.f32.mrf.mxu1 }
  0x95   :  { %v122_v51 = vadd.f32 %v121_v50, %v77_v49 }
  0x97   :  { %v125_v52 = vmax.f32 %v122_v51, 0.0 }
  0x99   :  { %198 = vmatmul.f32.vlgmr.msra.gmra.mxu3 %v125_v52 }
 0x114   :  { %v179_v61 = vpop.f32.mrf.mxu2 }
 0x115   :  { %v180_v62 = vadd.f32 %v257_v60, %v179_v61 }
 0x11c   :  { %v199_v63 = vpop.f32.mrf.mxu3 }
 0x11d   :  { %v200_v0 = vadd.f32 %v199_v63, %v180_v62 }
 0x11f   :  { %v202_v1 = vmax.f32 %v200_v0, 0.0 }
 0x121   :  { %239 = vmatmul.f32.vlgmr.msra.gmra.mxu0 %v202_v1 }
 0x19e   :  { %v240_v3 = vpop.f32.mrf.mxu0 }
 0x19f   :  { %v241_v4 = vadd.f32 %v258_v2, %v240_v3 }
 0x1a1   :  { %243 = vst [vmem:[%s413_s7] sm:$0xff] %v241_v4 }
 0x1a2   :  { %248 = vsyncpa [#allocation3], 1 }
 0x1a3   :  { %249 = vsyncpa [#allocation5], 1 }

</bundles_post_ra>
